<compile_context>
chip_gen: v7x
topology: tpu7x:2x2x1
jax: 0.10.0
libtpu: 0.0.40
codegen_flags: <defaults>
</compile_context>

<pallas_src>
import jax
import jax.numpy as jnp
from jax.experimental import pallas as pl
from jax.experimental.pallas import tpu as pltpu


def _matvec_kernel(w_ref, x_ref, o_ref):
    # w_ref: (8, d)   folded weight w = B0^T v0, replicated across 8 sublanes
    #                 so the MXU lhs is a full-sublane tile (avoids M=1 edge).
    # x_ref: (TN, d)  one streamed tile of rows of x.
    # o_ref: (1, TN)  lane-dense row of outputs for this tile.
    acc = jax.lax.dot_general(
        w_ref[...],
        x_ref[...],
        dimension_numbers=(((1,), (1,)), ((), ())),   # contract over d ("NT")
        preferred_element_type=jnp.float32,
    )                                                  # (8, TN), rows identical
    o_ref[...] = acc[0:1, :].astype(o_ref.dtype)


def model_forward(x, B0, v0, *, block_n=2048):
    """x: (N, d), B0: (k, d), v0: (k, 1).  Returns squeeze((x @ B0.T) @ v0)."""
    N, d = x.shape

    # Fold v into B once (tiny (k,) @ (k, d) contraction; XLA handles it).
    w = jnp.dot(v0[:, 0], B0)                                   # (d,)
    w8 = jnp.broadcast_to(w[None, :], (8, d)).astype(x.dtype)   # (8, d)

    # Tile over N; output lane dim wants multiples of 128, x sublane dim 8.
    tn = min(block_n, ((N + 127) // 128) * 128)
    n_pad = ((N + tn - 1) // tn) * tn
    if n_pad != N:
        x = jnp.pad(x, ((0, n_pad - N), (0, 0)))                # zero rows -> zero outputs
    num_tiles = n_pad // tn

    out = pl.pallas_call(
        _matvec_kernel,
        out_shape=jax.ShapeDtypeStruct((1, n_pad), x.dtype),
        grid_spec=pltpu.PrefetchScalarGridSpec(
            num_scalar_prefetch=0,
            grid=(num_tiles,),
            in_specs=[
                pl.BlockSpec((8, d), lambda i: (0, 0)),     # folded weight (tiny, resident)
                pl.BlockSpec((tn, d), lambda i: (i, 0)),    # streamed, double-buffered x tile
            ],
            out_specs=pl.BlockSpec((1, tn), lambda i: (0, i)),  # lane-dense row per tile
        ),
        compiler_params=pltpu.CompilerParams(
            dimension_semantics=("parallel",)),
    )(w8, x)

    # Drop row padding; torch .squeeze() removes all size-1 dims.
    return jnp.squeeze(out[0, :N])


if __name__ == "__main__":
    key = jax.random.PRNGKey(0)
    k_x, k_B, k_v = jax.random.split(key, 3)

    N, d, k = 8, 32, 16          # small shapes consistent with the module
    x = jax.random.normal(k_x, (N, d), dtype=jnp.float32)
    B0 = jax.random.normal(k_B, (k, d), dtype=jnp.float32)
    v0 = jax.random.normal(k_v, (k, 1), dtype=jnp.float32)

    y = model_forward(x, B0, v0)
    jax.block_until_ready(y)

    # reference check (plain JAX, un-fused association)
    y_ref = jnp.squeeze((x @ B0.T) @ v0)
    assert y.shape == (N,)
    assert jnp.allclose(y, y_ref, atol=1e-4, rtol=1e-4)

    print("KERNEL_OK")
</pallas_src>

<mosaic_0001>
module attributes {stable_mosaic.version = 11 : i64} {
  func.func @_matvec_kernel(%arg0: i32, %arg1: memref<8x32xf32, #tpu.memory_space<vmem>>, %arg2: memref<128x32xf32, #tpu.memory_space<vmem>>, %arg3: memref<1x128xf32, #tpu.memory_space<vmem>>) attributes {dimension_semantics = [#tpu.dimension_semantics<parallel>], iteration_bounds = array<i64: 1>, scalar_prefetch = 0 : i64, scratch_operands = 0 : i64, tpu.core_type = #tpu.core_type<tc>, window_params = [{pipeline_mode = #tpu.pipeline_mode<synchronous>, transform_indices = @transform_0, window_bounds = array<i64: 8, 32>}, {transform_indices = @transform_1, window_bounds = array<i64: 128, 32>}, {transform_indices = @transform_2, window_bounds = array<i64: 1, 128>}]} {
    %c0 = arith.constant 0 : index
    %c0_0 = arith.constant 0 : index
    %0 = vector.load %arg1[%c0, %c0_0] : memref<8x32xf32, #tpu.memory_space<vmem>>, vector<8x32xf32>
    %c0_1 = arith.constant 0 : index
    %c0_2 = arith.constant 0 : index
    %1 = vector.load %arg2[%c0_1, %c0_2] : memref<128x32xf32, #tpu.memory_space<vmem>>, vector<128x32xf32>
    %cst = arith.constant dense<0.000000e+00> : vector<8x128xf32>
    %2 = tpu.matmul %0, %1, %cst {dimension_numbers = #tpu.dot_dimension_numbers<[1], [1], [0], [0], [0, 0, 1, 0], [], []>} : vector<8x32xf32>, vector<128x32xf32>, vector<8x128xf32> -> vector<8x128xf32>
    %3 = vector.extract_strided_slice %2 {offsets = [0, 0], sizes = [1, 128], strides = [1, 1]} : vector<8x128xf32> to vector<1x128xf32>
    %c0_3 = arith.constant 0 : index
    %c0_4 = arith.constant 0 : index
    %4 = vector.load %arg3[%c0_3, %c0_4] : memref<1x128xf32, #tpu.memory_space<vmem>>, vector<1x128xf32>
    tpu.vector_store %arg3[%c0_3, %c0_4], %3 {strides = array<i32>} : memref<1x128xf32, #tpu.memory_space<vmem>>, vector<1x128xf32>,
    return
  }
  func.func @transform_0(%arg0: i32) -> (i32, i32) {
    %c0_i32 = arith.constant 0 : i32
    %c0_i32_0 = arith.constant 0 : i32
    %c0_i32_1 = arith.constant 0 : i32
    return %c0_i32, %c0_i32_0 : i32, i32
  }
  func.func @transform_1(%arg0: i32) -> (i32, i32) {
    %c0_i32 = arith.constant 0 : i32
    %c0_i32_0 = arith.constant 0 : i32
    return %arg0, %c0_i32 : i32, i32
  }
  func.func @transform_2(%arg0: i32) -> (i32, i32) {
    %c0_i32 = arith.constant 0 : i32
    %c0_i32_0 = arith.constant 0 : i32
    return %c0_i32, %arg0 : i32, i32
  }
}

</mosaic_0001>

<bundles_post_ra>
// kernel: tpu_custom_call.1
= control target key start
LH: loop header
LB: loop body
LE: loop exit
PB: predicated region body
PF: predicated region fallthrough
CT: control target
= control target key end

     0   :  { %vm29_vm0 = vcmask 261120   ;;  %v295_v2 = vmov 0.0|0.0   ;;  %vm296_vm2 = vmmov 0   ;;  %v297_v5 = vmov 0.0   ;;  %s400_s0 = inlined_call_operand.vmem [shape: f32[8,32], index: 0, kind: input, shape index: {}]   ;;  %s401_s1 = inlined_call_operand.vmem [shape: f32[128,32], index: 1, kind: input, shape index: {}]   ;;  %s402_s2 = inlined_call_operand.hbm [shape: f32[1,128], index: 2, kind: output, shape index: {}]  }
   0x1   :  { %v13_v0 = vld [vmem:[%s401_s1] sm:$0xff]  ;;  %v14_v1 = vld [vmem:[%s401_s1 + $0x8] sm:$0xff]  ;;  %235 = vmatprep.subr.bf16.mxu0 %v295_v2  ;;  %vm322_vm1 = vmpackc.low %vm29_vm0, %vm29_vm0  ;;  %232 = vmatprep.mubr.msk.f32.mxu0 %vm296_vm2, %v297_v5 }
   0x2   :  { %v236_v3 = vpack.c.bf16 %v14_v1, %v13_v0  ;;  %v15_v6 = vld [vmem:[%s401_s1 + $0x10] sm:$0xff]  ;;  %v16_v7 = vld [vmem:[%s401_s1 + $0x18] sm:$0xff] }
   0x4   :  { %238 = vmatpush3.bf16.xpose.msk.msra.mxu0 %vm322_vm1, %v236_v3 }
   0x5   :  { %239 = vmatprep.subr.bf16.mxu0 %v295_v2 }
   0x6   :  { %7 = vsyncpa [#allocation3], 0  ;;  %v240_v8 = vpack.c.bf16 %v16_v7, %v15_v6  ;;  %v17_v9 = vld [vmem:[%s401_s1 + $0x20] sm:$0xff]  ;;  %v18_v10 = vld [vmem:[%s401_s1 + $0x28] sm:$0xff]  ;;  %s298_s15 = smov [#allocation2]  }
   0x7   :  { %v244_v11 = vpack.c.bf16 %v18_v10, %v17_v9  ;;  %v19_v12 = vld [vmem:[%s401_s1 + $0x30] sm:$0xff]  ;;  %v20_v13 = vld [vmem:[%s401_s1 + $0x38] sm:$0xff]  ;;  %v21_v15 = vld [vmem:[%s401_s1 + $0x40] sm:$0xff]  ;;  %s158_s16 = sshll.u32 %s298_s15, 4  ;;  %s159_s16 = int_to_ptr.vmem [resolvable:$true] %s158_s16 }
   0x8   :  { %v248_v14 = vpack.c.bf16 %v20_v13, %v19_v12  ;;  %v22_v16 = vld [vmem:[%s401_s1 + $0x48] sm:$0xff]  ;;  %v23_v18 = vld [vmem:[%s401_s1 + $0x50] sm:$0xff]  ;;  %v24_v19 = vld [vmem:[%s401_s1 + $0x58] sm:$0xff]  ;;  %s271_s17 = scalar_lea.vmem %s159_s16, 16  ;;  %s275_s18 = scalar_lea.vmem %s159_s16, 32 }
   0x9   :  { %v252_v17 = vpack.c.bf16 %v22_v16, %v21_v15  ;;  %v256_v20 = vpack.c.bf16 %v24_v19, %v23_v18  ;;  %v25_v21 = vld [vmem:[%s401_s1 + $0x60] sm:$0xff]  ;;  %v26_v22 = vld [vmem:[%s401_s1 + $0x68] sm:$0xff]  ;;  %v27_v24 = vld [vmem:[%s401_s1 + $0x70] sm:$0xff]  ;;  %p272_p0 = scmp.ne.s32.totalorder %s159_s16, %s271_s17  ;;  %p276_p1 = scmp.lt.s32.totalorder %s159_s16, %s159_s16 }
   0xa   :  { %v260_v23 = vpack.c.bf16 %v26_v22, %v25_v21  ;;  %v28_v25 = vld [vmem:[%s401_s1 + $0x78] sm:$0xff]  ;;  %v12_v27 = vld [vmem:[%s400_s0] sm:$0xff]  ;;  %p277_p2 = scmp.lt.s32.totalorder %s275_s18, %s271_s17 }
   0xb   :  { %v264_v26 = vpack.c.bf16 %v28_v25, %v27_v24 }
   0xc   :  { %242 = vmatpush3.bf16.xpose.msk.msra.mxu0 %vm322_vm1, %v240_v8  ;;  %p278_p3 = por %p277_p2, %p276_p1 }
   0xd   :  { %243 = vmatprep.subr.bf16.mxu0 %v295_v2 }
   0xe   :  { %p279_p4 = pnand %p278_p3, %p272_p0 }
  0x14   :  { %246 = vmatpush3.bf16.xpose.msk.msra.mxu0 %vm322_vm1, %v244_v11 }
  0x15   :  { %247 = vmatprep.subr.bf16.mxu0 %v295_v2 }
  0x1c   :  { %250 = vmatpush3.bf16.xpose.msk.msra.mxu0 %vm322_vm1, %v248_v14 }
  0x1d   :  { %251 = vmatprep.subr.bf16.mxu0 %v295_v2 }
  0x24   :  { %254 = vmatpush3.bf16.xpose.msk.msra.mxu0 %vm322_vm1, %v252_v17 }
  0x25   :  { %255 = vmatprep.subr.bf16.mxu0 %v295_v2 }
  0x2c   :  { %258 = vmatpush3.bf16.xpose.msk.msra.mxu0 %vm322_vm1, %v256_v20 }
  0x2d   :  { %259 = vmatprep.subr.bf16.mxu0 %v295_v2 }
  0x34   :  { %262 = vmatpush3.bf16.xpose.msk.msra.mxu0 %vm322_vm1, %v260_v23 }
  0x35   :  { %263 = vmatprep.subr.bf16.mxu0 %v295_v2 }
  0x3c   :  { %266 = vmatpush3.bf16.xpose.msk.msra.mxu0 %vm322_vm1, %v264_v26 }
  0x43   :  { %233 = vmatmul.mubr.msk.f32.vlgmr.msra.gmra.mrb[0].mxu0 %vm29_vm0, %v12_v27 }
 0x116   :  { %v147_v28 = vpop.f32.mrb[0].mxu0 }
 0x117   :  { %151 = vst [vmem:[#allocation2] sm:$0x1] %v147_v28  ;;  %v234_v29 = vpop.f32.mrb[1].mxu0 }
 0x118   :  { %282 = shalt.err (!%p279_p4)
}
 0x119   :  { %s283_s0 = scalar_lea.hbm %s402_s2, 16 }
 0x11a   :  { %p284_p5 = scmp.ne.s32.totalorder %s402_s2, %s283_s0  ;;  %p287_p6 = scmp.lt.u32.totalorder %s283_s0, %s402_s2 }
 0x11c   :  { %p289_p7 = pnand %p287_p6, %p284_p5 }
 0x11e   :  { %292 = shalt.err (!%p289_p7)
}
 0x11f   :  { %161 = dma.vmem_to_hbm [thread:$0]  %s159_s16, 16, %s402_s2, [#allocation3]  }
 0x120   :  { %293 = dma.done.wait [#allocation3], 16  }
 0x121   :  { %294 = vsyncadd [#allocation3], 4294967280 }
 0x122   :  { %165 = vsyncpa [#allocation3], 1 }

</bundles_post_ra>
